<compile_context>
chip_gen: v7x
topology: tpu7x:2x2x1
jax: 0.10.0
libtpu: 0.0.40
codegen_flags: <defaults>
</compile_context>

<pallas_src>
import jax
import jax.numpy as jnp
from jax.experimental import pallas as pl
from jax.experimental.pallas import tpu as pltpu

_LANE = 128            # lane width: last-dim tiling quantum
_DEF_BLOCK_B = 32768   # target batch-lane tile (~1.3 MiB of HBM traffic per step)


def _round_up(n: int, m: int) -> int:
    return ((n + m - 1) // m) * m


def _cdiv(a: int, b: int) -> int:
    return (a + b - 1) // b


def _choose_tiling(batch: int, block_b: int):
    """Pick (tile, padded_batch) so that tiles are large (amortize per-step overhead),
    there are >=2 grid steps whenever possible (v7x megacore), and padding is minimal."""
    bp_min = _round_up(max(batch, 1), _LANE)
    blk = max(_LANE, _round_up(block_b, _LANE))
    steps = max(1, _cdiv(bp_min, blk))
    if bp_min >= 2 * _LANE:
        steps = max(steps, 2)            # keep the "parallel" axis shardable on v7x
    tb = _round_up(_cdiv(bp_min, steps), _LANE)
    bp = tb * steps
    return tb, bp


def _mlp_kernel(p_ref, xt_ref, out_ref):
    """Transposed-layout MLP tile.

    p_ref  : (13,) f32 in SMEM:
             [w1_00, w1_01, w1_10, w1_11, w1_20, w1_21, b1_0, b1_1, b1_2,
              w2_0, w2_1, w2_2, b2_0]
    xt_ref : (2, TB)  input, batch on lanes
    out_ref: (8, TB)  rows 0:3 = z1^T, 3:6 = h1^T, 6:7 = z2^T, 7:8 = h2^T
    """
    x0 = xt_ref[0:1, :]                                   # (1, TB)
    x1 = xt_ref[1:2, :]                                   # (1, TB)

    # Hidden layer: z1_j = w1[j,0]*x0 + w1[j,1]*x1 + b1[j]  (sreg-scalar * vector FMAs)
    z1_0 = p_ref[0] * x0 + p_ref[1] * x1 + p_ref[6]
    z1_1 = p_ref[2] * x0 + p_ref[3] * x1 + p_ref[7]
    z1_2 = p_ref[4] * x0 + p_ref[5] * x1 + p_ref[8]
    h1_0 = jnp.maximum(z1_0, 0.0)
    h1_1 = jnp.maximum(z1_1, 0.0)
    h1_2 = jnp.maximum(z1_2, 0.0)

    out_ref[0:1, :] = z1_0
    out_ref[1:2, :] = z1_1
    out_ref[2:3, :] = z1_2
    out_ref[3:4, :] = h1_0
    out_ref[4:5, :] = h1_1
    out_ref[5:6, :] = h1_2

    # Output layer (K = 3) + exact sigmoid (EUP exp + divide, hidden under the DMA).
    z2 = p_ref[9] * h1_0 + p_ref[10] * h1_1 + p_ref[11] * h1_2 + p_ref[12]
    h2 = 1.0 / (1.0 + jnp.exp(-z2))

    out_ref[6:7, :] = z2
    out_ref[7:8, :] = h2


def pack_params(w1, b1, w2, b2):
    """One-time packing: flatten all 13 parameter scalars into a single f32 vector
    (row-major W1, then b1, W2, b2) destined for SMEM."""
    return jnp.concatenate([
        jnp.asarray(w1, jnp.float32).reshape(-1),   # 6
        jnp.asarray(b1, jnp.float32).reshape(-1),   # 3
        jnp.asarray(w2, jnp.float32).reshape(-1),   # 3
        jnp.asarray(b2, jnp.float32).reshape(-1),   # 1
    ])


def mlp_forward(x, params, *, block_b=_DEF_BLOCK_B):
    """x: (B, 2) f32, params: (13,) f32. Returns (z1, h1, z2, h2) like the PyTorch forward."""
    B = x.shape[0]
    tb, bp = _choose_tiling(B, block_b)

    # Layout flip: batch onto the lane axis; pad (no zeros+scatter materialization).
    xt = jnp.pad(x.astype(jnp.float32).T, ((0, 0), (0, bp - B)))

    out = pl.pallas_call(
        _mlp_kernel,
        out_shape=jax.ShapeDtypeStruct((8, bp), jnp.float32),
        grid_spec=pltpu.PrefetchScalarGridSpec(
            num_scalar_prefetch=0,
            grid=(bp // tb,),
            in_specs=[
                pl.BlockSpec(memory_space=pltpu.MemorySpace.SMEM),  # 13 param scalars
                pl.BlockSpec((2, tb), lambda i: (0, i)),            # x^T tile (lane-dense)
            ],
            out_specs=pl.BlockSpec((8, tb), lambda i: (0, i)),
        ),
        compiler_params=pltpu.CompilerParams(
            dimension_semantics=("parallel",),        # both TensorCores on v7x
            vmem_limit_bytes=32 * 1024 * 1024,        # big tiles even on v5e's 16 MiB default
        ),
    )(params, xt)

    # Un-pack with a SINGLE relayout pass: slice off padding, one transpose, row slices.
    out_t = out[:, :B].T                              # (B, 8)
    z1 = out_t[:, 0:3]
    h1 = out_t[:, 3:6]
    z2 = out_t[:, 6:7]
    h2 = out_t[:, 7:8]
    return z1, h1, z2, h2


if __name__ == "__main__":
    key = jax.random.PRNGKey(0)
    k_x, k_w1, k_w2 = jax.random.split(key, 3)

    # B not a multiple of 128: exercises padding and a 2-step "parallel" grid.
    B = 1000
    x = jax.random.normal(k_x, (B, 2), dtype=jnp.float32)

    # Deterministic parameter init mirroring the PyTorch module's __init__:
    #   hidden.weight ~ N(0, 0.1), out.weight ~ N(0, 0.1), biases = 0.
    w1 = 0.1 * jax.random.normal(k_w1, (3, 2), dtype=jnp.float32)   # hidden.weight
    b1 = jnp.zeros((3,), dtype=jnp.float32)                         # hidden.bias
    w2 = 0.1 * jax.random.normal(k_w2, (1, 3), dtype=jnp.float32)   # out.weight
    b2 = jnp.zeros((1,), dtype=jnp.float32)                         # out.bias

    params = pack_params(w1, b1, w2, b2)
    fwd = jax.jit(mlp_forward)        # fuse the tiny pre/post layout glue around the kernel
    z1, h1, z2, h2 = fwd(x, params)
    jax.block_until_ready((z1, h1, z2, h2))

    # Plain-JAX reference (same math as the PyTorch forward).
    z1_ref = x @ w1.T + b1
    h1_ref = jnp.maximum(z1_ref, 0.0)
    z2_ref = h1_ref @ w2.T + b2
    h2_ref = jax.nn.sigmoid(z2_ref)
    assert jnp.allclose(z1, z1_ref, atol=1e-5)
    assert jnp.allclose(h1, h1_ref, atol=1e-5)
    assert jnp.allclose(z2, z2_ref, atol=1e-5)
    assert jnp.allclose(h2, h2_ref, atol=1e-5)   # exact sigmoid now

    print("KERNEL_OK")
</pallas_src>

<mosaic_0001>
module attributes {stable_mosaic.version = 11 : i64} {
  func.func @_mlp_kernel(%arg0: i32, %arg1: memref<13xf32, #tpu.memory_space<smem>>, %arg2: memref<2x512xf32, #tpu.memory_space<vmem>>, %arg3: memref<8x512xf32, #tpu.memory_space<vmem>>) attributes {dimension_semantics = [#tpu.dimension_semantics<parallel>], iteration_bounds = array<i64: 2>, scalar_prefetch = 0 : i64, scratch_operands = 0 : i64, tpu.core_type = #tpu.core_type<tc>, window_params = [{transform_indices = @transform_0, window_bounds = array<i64: 13>}, {transform_indices = @transform_1, window_bounds = array<i64: 2, 512>}, {transform_indices = @transform_2, window_bounds = array<i64: 8, 512>}]} {
    %c0 = arith.constant 0 : index
    %c0_0 = arith.constant 0 : index
    %0 = vector.load %arg2[%c0, %c0_0] : memref<2x512xf32, #tpu.memory_space<vmem>>, vector<1x512xf32>
    %c1 = arith.constant 1 : index
    %c0_1 = arith.constant 0 : index
    %1 = vector.load %arg2[%c1, %c0_1] : memref<2x512xf32, #tpu.memory_space<vmem>>, vector<1x512xf32>
    %c0_2 = arith.constant 0 : index
    %2 = memref.load %arg1[%c0_2] : memref<13xf32, #tpu.memory_space<smem>>
    %3 = vector.broadcast %2 : f32 to vector<1x512xf32>
    %4 = arith.mulf %3, %0 : vector<1x512xf32>
    %c1_3 = arith.constant 1 : index
    %5 = memref.load %arg1[%c1_3] : memref<13xf32, #tpu.memory_space<smem>>
    %6 = vector.broadcast %5 : f32 to vector<1x512xf32>
    %7 = arith.mulf %6, %1 : vector<1x512xf32>
    %8 = arith.addf %4, %7 : vector<1x512xf32>
    %c6 = arith.constant 6 : index
    %9 = memref.load %arg1[%c6] : memref<13xf32, #tpu.memory_space<smem>>
    %10 = vector.broadcast %9 : f32 to vector<1x512xf32>
    %11 = arith.addf %8, %10 : vector<1x512xf32>
    %c2 = arith.constant 2 : index
    %12 = memref.load %arg1[%c2] : memref<13xf32, #tpu.memory_space<smem>>
    %13 = vector.broadcast %12 : f32 to vector<1x512xf32>
    %14 = arith.mulf %13, %0 : vector<1x512xf32>
    %c3 = arith.constant 3 : index
    %15 = memref.load %arg1[%c3] : memref<13xf32, #tpu.memory_space<smem>>
    %16 = vector.broadcast %15 : f32 to vector<1x512xf32>
    %17 = arith.mulf %16, %1 : vector<1x512xf32>
    %18 = arith.addf %14, %17 : vector<1x512xf32>
    %c7 = arith.constant 7 : index
    %19 = memref.load %arg1[%c7] : memref<13xf32, #tpu.memory_space<smem>>
    %20 = vector.broadcast %19 : f32 to vector<1x512xf32>
    %21 = arith.addf %18, %20 : vector<1x512xf32>
    %c4 = arith.constant 4 : index
    %22 = memref.load %arg1[%c4] : memref<13xf32, #tpu.memory_space<smem>>
    %23 = vector.broadcast %22 : f32 to vector<1x512xf32>
    %24 = arith.mulf %23, %0 : vector<1x512xf32>
    %c5 = arith.constant 5 : index
    %25 = memref.load %arg1[%c5] : memref<13xf32, #tpu.memory_space<smem>>
    %26 = vector.broadcast %25 : f32 to vector<1x512xf32>
    %27 = arith.mulf %26, %1 : vector<1x512xf32>
    %28 = arith.addf %24, %27 : vector<1x512xf32>
    %c8 = arith.constant 8 : index
    %29 = memref.load %arg1[%c8] : memref<13xf32, #tpu.memory_space<smem>>
    %30 = vector.broadcast %29 : f32 to vector<1x512xf32>
    %31 = arith.addf %28, %30 : vector<1x512xf32>
    %cst = arith.constant 0.000000e+00 : f32
    %32 = vector.broadcast %cst : f32 to vector<1x512xf32>
    %33 = arith.maximumf %11, %32 : vector<1x512xf32>
    %cst_4 = arith.constant 0.000000e+00 : f32
    %34 = vector.broadcast %cst_4 : f32 to vector<1x512xf32>
    %35 = arith.maximumf %21, %34 : vector<1x512xf32>
    %cst_5 = arith.constant 0.000000e+00 : f32
    %36 = vector.broadcast %cst_5 : f32 to vector<1x512xf32>
    %37 = arith.maximumf %31, %36 : vector<1x512xf32>
    %c0_6 = arith.constant 0 : index
    %c0_7 = arith.constant 0 : index
    %38 = vector.load %arg3[%c0_6, %c0_7] : memref<8x512xf32, #tpu.memory_space<vmem>>, vector<1x512xf32>
    tpu.vector_store %arg3[%c0_6, %c0_7], %11 {strides = array<i32>} : memref<8x512xf32, #tpu.memory_space<vmem>>, vector<1x512xf32>,
    %c1_8 = arith.constant 1 : index
    %c0_9 = arith.constant 0 : index
    %39 = vector.load %arg3[%c1_8, %c0_9] : memref<8x512xf32, #tpu.memory_space<vmem>>, vector<1x512xf32>
    tpu.vector_store %arg3[%c1_8, %c0_9], %21 {strides = array<i32>} : memref<8x512xf32, #tpu.memory_space<vmem>>, vector<1x512xf32>,
    %c2_10 = arith.constant 2 : index
    %c0_11 = arith.constant 0 : index
    %40 = vector.load %arg3[%c2_10, %c0_11] : memref<8x512xf32, #tpu.memory_space<vmem>>, vector<1x512xf32>
    tpu.vector_store %arg3[%c2_10, %c0_11], %31 {strides = array<i32>} : memref<8x512xf32, #tpu.memory_space<vmem>>, vector<1x512xf32>,
    %c3_12 = arith.constant 3 : index
    %c0_13 = arith.constant 0 : index
    %41 = vector.load %arg3[%c3_12, %c0_13] : memref<8x512xf32, #tpu.memory_space<vmem>>, vector<1x512xf32>
    tpu.vector_store %arg3[%c3_12, %c0_13], %33 {strides = array<i32>} : memref<8x512xf32, #tpu.memory_space<vmem>>, vector<1x512xf32>,
    %c4_14 = arith.constant 4 : index
    %c0_15 = arith.constant 0 : index
    %42 = vector.load %arg3[%c4_14, %c0_15] : memref<8x512xf32, #tpu.memory_space<vmem>>, vector<1x512xf32>
    tpu.vector_store %arg3[%c4_14, %c0_15], %35 {strides = array<i32>} : memref<8x512xf32, #tpu.memory_space<vmem>>, vector<1x512xf32>,
    %c5_16 = arith.constant 5 : index
    %c0_17 = arith.constant 0 : index
    %43 = vector.load %arg3[%c5_16, %c0_17] : memref<8x512xf32, #tpu.memory_space<vmem>>, vector<1x512xf32>
    tpu.vector_store %arg3[%c5_16, %c0_17], %37 {strides = array<i32>} : memref<8x512xf32, #tpu.memory_space<vmem>>, vector<1x512xf32>,
    %c9 = arith.constant 9 : index
    %44 = memref.load %arg1[%c9] : memref<13xf32, #tpu.memory_space<smem>>
    %45 = vector.broadcast %44 : f32 to vector<1x512xf32>
    %46 = arith.mulf %45, %33 : vector<1x512xf32>
    %c10 = arith.constant 10 : index
    %47 = memref.load %arg1[%c10] : memref<13xf32, #tpu.memory_space<smem>>
    %48 = vector.broadcast %47 : f32 to vector<1x512xf32>
    %49 = arith.mulf %48, %35 : vector<1x512xf32>
    %50 = arith.addf %46, %49 : vector<1x512xf32>
    %c11 = arith.constant 11 : index
    %51 = memref.load %arg1[%c11] : memref<13xf32, #tpu.memory_space<smem>>
    %52 = vector.broadcast %51 : f32 to vector<1x512xf32>
    %53 = arith.mulf %52, %37 : vector<1x512xf32>
    %54 = arith.addf %50, %53 : vector<1x512xf32>
    %c12 = arith.constant 12 : index
    %55 = memref.load %arg1[%c12] : memref<13xf32, #tpu.memory_space<smem>>
    %56 = vector.broadcast %55 : f32 to vector<1x512xf32>
    %57 = arith.addf %54, %56 : vector<1x512xf32>
    %cst_18 = arith.constant 0.000000e+00 : f32
    %58 = vector.broadcast %cst_18 : f32 to vector<1x512xf32>
    %59 = arith.subf %58, %57 : vector<1x512xf32>
    %60 = math.exp %59 : vector<1x512xf32>
    %cst_19 = arith.constant 1.000000e+00 : f32
    %61 = vector.broadcast %cst_19 : f32 to vector<1x512xf32>
    %62 = arith.addf %61, %60 : vector<1x512xf32>
    %cst_20 = arith.constant 1.000000e+00 : f32
    %63 = vector.broadcast %cst_20 : f32 to vector<1x512xf32>
    %64 = arith.divf %63, %62 : vector<1x512xf32>
    %c6_21 = arith.constant 6 : index
    %c0_22 = arith.constant 0 : index
    %65 = vector.load %arg3[%c6_21, %c0_22] : memref<8x512xf32, #tpu.memory_space<vmem>>, vector<1x512xf32>
    tpu.vector_store %arg3[%c6_21, %c0_22], %57 {strides = array<i32>} : memref<8x512xf32, #tpu.memory_space<vmem>>, vector<1x512xf32>,
    %c7_23 = arith.constant 7 : index
    %c0_24 = arith.constant 0 : index
    %66 = vector.load %arg3[%c7_23, %c0_24] : memref<8x512xf32, #tpu.memory_space<vmem>>, vector<1x512xf32>
    tpu.vector_store %arg3[%c7_23, %c0_24], %64 {strides = array<i32>} : memref<8x512xf32, #tpu.memory_space<vmem>>, vector<1x512xf32>,
    return
  }
  func.func @transform_0(%arg0: i32) -> i32 {
    %c0_i32 = arith.constant 0 : i32
    %c0_i32_0 = arith.constant 0 : i32
    return %c0_i32 : i32
  }
  func.func @transform_1(%arg0: i32) -> (i32, i32) {
    %c0_i32 = arith.constant 0 : i32
    %c0_i32_0 = arith.constant 0 : i32
    return %c0_i32, %arg0 : i32, i32
  }
  func.func @transform_2(%arg0: i32) -> (i32, i32) {
    %c0_i32 = arith.constant 0 : i32
    %c0_i32_0 = arith.constant 0 : i32
    return %c0_i32, %arg0 : i32, i32
  }
}

</mosaic_0001>

<bundles_post_ra>
// kernel: mlp_forward.1
= control target key start
LH: loop header
LB: loop body
LE: loop exit
PB: predicated region body
PF: predicated region fallthrough
CT: control target
= control target key end

     0   :  { %7 = vsyncpa [#allocation3], 0  ;;  %s411_s9 = smov 0   ;;  %s482_s0 = inlined_call_operand.vmem [shape: f32[13], index: 0, kind: input, shape index: {}]   ;;  %s483_s1 = inlined_call_operand.vmem [shape: f32[2,1024], index: 1, kind: input, shape index: {}]   ;;  %s484_s2 = inlined_call_operand.vmem [shape: f32[8,1024], index: 2, kind: output, shape index: {}]  }
   0x1 LB: > { %s312_s10 = sadd.s32 4294967295, %s393_s9   ;;  %p314_p0 = scmp.ge.s32.totalorder %s393_s9, 1  ;;  %s393_s9 = sphi %s411_s9, %s13_s9  }
   0x2   : > { %p91_p1 = scmp.lt.s32.totalorder %s393_s9, 3  ;;  %s104_s13 = sshll.u32 %s482_s0, 4  ;;  %s105_s13 = int_to_ptr.vmem [resolvable:$true] %s104_s13 }
   0x3   : > { %p426_p3 = scmp.eq.s32.totalorder %s312_s10, 0  ;;  %s368_s16 = scalar_lea.vmem %s105_s13, 16 }
   0x4   : > { %p422_p2 = pnand %p314_p0, %p91_p1  ;;  %p369_p6 = scmp.ne.s32.totalorder %s105_s13, %s368_s16 }
   0x5   : > { %p376_p10 = scmp.lt.s32.totalorder %s105_s13, %s105_s13  ;;  %p377_p11 = scmp.lt.s32.totalorder %s368_s16, %s368_s16 }
   0x6   : > { %p349_p4 = pneg %p422_p2 }
   0x7   : > { %p378_p12 = por %p377_p11, %p376_p10 }
   0x8   : > { %p350_p5 = pnand %p426_p3, %p349_p4 }
   0xa   : > { %p370_p7 = pneg %p350_p5 }
   0xc   : > { %p371_p8 = pnand %p370_p7, %p369_p6 }
   0xe   : > { %p372_p9 = pneg %p371_p8 }
  0x10   : > { %p379_p13 = pnand %p378_p12, %p372_p9 }
  0x12   : > { %382 = shalt.err (!%p379_p13)
}
  0x13   : > { %s395_s17 = smov [#allocation2]   ;;  %126 = sbr.rel (%p422_p2) target bundleno = 86 (0x56), region = 28 }
  0x14   : > { %352 = dma.vmem_to_smem (!%p350_p5), %s105_s13, 16, %s395_s17, [#allocation3]  }
  0x1a   : > { %388 = dma.done.wait (%p426_p3), [#allocation3], 16  }
  0x1b   : > { %390 = vsyncadd (%p426_p3), [#allocation3], 4294967280 }
  0x1c   : > { %132 = sfence }
  0x1d   : > { %s319_s18 = sshll.u32 %s312_s10, 2  ;;  %s164_s19 = sld [smem:[#allocation2]]  ;;  %v197_v4 = vlaneseq }
  0x1e   : > { %p150_p0 = scmp.lt.s32.totalorder %s319_s18, 7  ;;  %s324_s20 = sld [smem:[#allocation2 + $0x1]] }
  0x1f   : > { %s325_s21 = sld [smem:[#allocation2 + $0x6]]  ;;  %s326_s22 = sld [smem:[#allocation2 + $0x2]]  ;;  %vm450_vm0 = vcmp.lt.s32.totalorder %v197_v4, 512 }
  0x20   : > { %s490_s18 = smov (!%p150_p0, %s319_s18), 7  ;;  %s327_s23 = sld [smem:[#allocation2 + $0x3]] }
  0x21   : > { %s440_s24 = sld [smem:[#allocation2 + $0x7]]  ;;  %s320_s25 = sshll.u32 %s490_s18, 1 }
  0x22   : > { %s153_s28 = scalar_lea.vmem %s483_s1, %s320_s25  ;;  %s322_s29 = sshll.u32 %s490_s18, 3 }
  0x23   : > { %v165_v0 = vstv %s164_s19  ;;  %v161_v1 = vld [vmem:[%s153_s28] ss:$2 sm:$0xf]  ;;  %v323_v2 = vld [vmem:[%s153_s28 + $0x1] ss:$2 sm:$0xf]  ;;  %s448_s10 = scalar_lea.vmem %s484_s2, %s322_s29 }
  0x24   : > { %v168_v3 = vstv %s324_s20  ;;  %v166_v5 = vmul.f32 %v165_v0, %v161_v1  ;;  %s329_s30 = sld [smem:[#allocation2 + $0x4]]  ;;  %s330_s3 = sld [smem:[#allocation2 + $0x5]] }
  0x25   : > { %v169_v6 = vmul.f32 %v323_v2, %v168_v3  ;;  %v175_v7 = vstv %s326_s22  ;;  %v172_v8 = vstv %s325_s21  ;;  %s331_s4 = sld [smem:[#allocation2 + $0x8]]  ;;  %s337_s5 = sld [smem:[#allocation2 + $0x9]] }
  0x26   : > { %v176_v9 = vmul.f32 %v175_v7, %v161_v1  ;;  %v178_v11 = vstv %s327_s23  ;;  %s338_s6 = sld [smem:[#allocation2 + $0xa]]  ;;  %s339_s11 = sld [smem:[#allocation2 + $0xb]] }
  0x27   : > { %v170_v10 = vadd.f32 %v169_v6, %v166_v5  ;;  %v179_v13 = vmul.f32 %v323_v2, %v178_v11  ;;  %v182_v15 = vstv %s440_s24  ;;  %s340_s12 = sld [smem:[#allocation2 + $0xc]] }
  0x29   : > { %v173_v14 = vadd.f32 %v172_v8, %v170_v10  ;;  %v180_v16 = vadd.f32 %v179_v13, %v176_v9 }
  0x2a   : > { %v185_v17 = vstv %s329_s30  ;;  %v188_v18 = vstv %s330_s3 }
  0x2b   : > { %201 = vst.msk [vmem:[%s448_s10] ss:$8 sm:$0xf] %vm450_vm0, %v173_v14  ;;  %v194_v19 = vmax.f32 %v173_v14, 0.0  ;;  %v183_v20 = vadd.f32 %v182_v15, %v180_v16  ;;  %v186_v21 = vmul.f32 %v185_v17, %v161_v1  ;;  %v189_v22 = vmul.f32 %v323_v2, %v188_v18 }
  0x2c   : > { %v192_v23 = vstv %s331_s4  ;;  %v219_v24 = vstv %s337_s5  ;;  %v222_v25 = vstv %s338_s6  ;;  %v226_v31 = vstv %s339_s11 }
  0x2d   : > { %334 = vst.msk [vmem:[%s448_s10 + $0x3] ss:$8 sm:$0xf] %vm450_vm0, %v194_v19  ;;  %332 = vst.msk [vmem:[%s448_s10 + $0x1] ss:$8 sm:$0xf] %vm450_vm0, %v183_v20  ;;  %v190_v26 = vadd.f32 %v189_v22, %v186_v21  ;;  %v220_v27 = vmul.f32 %v219_v24, %v194_v19  ;;  %v230_v35 = vstv %s340_s12 }
  0x2e   : > { %v195_v28 = vmax.f32 %v183_v20, 0.0 }
  0x2f   : > { %v193_v29 = vadd.f32 %v192_v23, %v190_v26 }
  0x30   : > { %335 = vst.msk [vmem:[%s448_s10 + $0x4] ss:$8 sm:$0xf] %vm450_vm0, %v195_v28  ;;  %v223_v30 = vmul.f32 %v222_v25, %v195_v28 }
  0x31   : > { %333 = vst.msk [vmem:[%s448_s10 + $0x2] ss:$8 sm:$0xf] %vm450_vm0, %v193_v29  ;;  %v196_v32 = vmax.f32 %v193_v29, 0.0 }
  0x32   : > { %v224_v33 = vadd.f32 %v223_v30, %v220_v27 }
  0x33   : > { %336 = vst.msk [vmem:[%s448_s10 + $0x5] ss:$8 sm:$0xf] %vm450_vm0, %v196_v32  ;;  %v227_v34 = vmul.f32 %v226_v31, %v196_v32 }
  0x35   : > { %v228_v36 = vadd.f32 %v227_v34, %v224_v33 }
  0x37   : > { %v231_v37 = vadd.f32 %v230_v35, %v228_v36 }
  0x39   : > { %v232_v38 = vsub.f32 0.0, %v231_v37  ;;  %341 = vst.msk [vmem:[%s448_s10 + $0x6] ss:$8 sm:$0xf] %vm450_vm0, %v231_v37 }
  0x3b   : > { %v233_v39 = vmul.f32 1.442695, %v232_v38 }
  0x3d   : > { %364 = vpow2.f32 %v233_v39 }
  0x47   : > { %v365_v40 = vpop.eup %364 }
  0x48   : > { %v235_v41 = vadd.f32 1.0, %v365_v40 }
  0x4a   : > { %366 = vrcp.f32 %v235_v41 }
  0x54   : > { %v367_v42 = vpop.eup %366 }
  0x55   : > { %342 = vst.msk [vmem:[%s448_s10 + $0x7] ss:$8 sm:$0xf] %vm450_vm0, %v367_v42 }
  0x56 PF: > { %s13_s9 = sadd.s32 1, %s393_s9  }
  0x57   : > { %p10_p1 = scmp.ge.s32.totalorder %s13_s9, 4  }
  0x59   :  { %12 = sbr.rel (!%p10_p1) target bundleno = 1 (0x1), region = 71 }
  0x60   :  { %266 = vsyncpa [#allocation3], 1 }
  0x61   :  { %268 = vsyncpa [#allocation3 + $0x1], 1 }

</bundles_post_ra>
